<compile_context>
chip_gen: v5e
topology: v5e:2x2
jax: 0.10.0
libtpu: 0.0.40
codegen_flags: <defaults>
</compile_context>

<pallas_src>
import jax
import jax.numpy as jnp
from jax.experimental import pallas as pl
from jax.experimental.pallas import tpu as pltpu

EPS = 1e-7


def _cepstral_norm_kernel(y_ref, gamma_ref, beta_ref, o_ref):
    # y_ref:     (TM, TN, K)
    # gamma_ref: (1,  TN, 1)
    # beta_ref:  (1,  TN, 1)
    # o_ref:     (TM, TN, K)
    y = y_ref[...].astype(jnp.float32)

    # Two-pass mean / variance over the length axis K (matches reference numerics).
    mean = jnp.mean(y, axis=-1, keepdims=True)                   # (TM, TN, 1)
    centered = y - mean
    var = jnp.mean(centered * centered, axis=-1, keepdims=True)  # (TM, TN, 1)

    # Per-(batch, channel) scale/shift; rsqrt runs on the EUP (separate VLIW slot).
    inv = jax.lax.rsqrt(var + EPS)                               # (TM, TN, 1)
    gamma = gamma_ref[...].astype(jnp.float32)                   # (1, TN, 1)
    beta = beta_ref[...].astype(jnp.float32)                     # (1, TN, 1)
    scale = gamma * inv                                          # (TM, TN, 1)
    shift = beta - mean * scale                                  # (TM, TN, 1)

    # Single FMA per element; no wide divide, no `centered` on the output path.
    o_ref[...] = (y * scale + shift).astype(o_ref.dtype)


def _choose_tiles(M, N, K, itemsize, block_budget_bytes=2 * 1024 * 1024):
    """Pick (TM, TN) so one block is <= block_budget_bytes.

    With double-buffered input + output that is <= 4 * budget (= 8 MiB) of pipeline
    buffers, which fits every generation's scoped-VMEM default (v5e 16 MiB,
    v6e 32 MiB, v7x 32 MiB) with plenty of headroom.
    """
    row_bytes = max(1, K * itemsize)
    tn = min(N, max(1, block_budget_bytes // row_bytes))
    if tn < N:
        # Sublane-align the channel tile (f32 sublane = 8).
        tn = max(8, (tn // 8) * 8)
        tm = 1
    else:
        # Whole channel axis fits; pack multiple batch rows per step.
        tn = N
        tm = min(M, max(1, block_budget_bytes // (tn * row_bytes)))
    return tm, tn


def cepstral_norm(y, gamma, beta):
    """Pallas TPU implementation of CepstralNorm.forward.

    Args:
      y:     [M, N, K] float array
      gamma: [1, N, 1]
      beta:  [1, N, 1]
    Returns:
      [M, N, K] normalized array, same dtype as y.
    """
    M, N, K = y.shape
    tm, tn = _choose_tiles(M, N, K, y.dtype.itemsize)
    grid = (pl.cdiv(M, tm), pl.cdiv(N, tn))

    # TODO(synk): if real-world K is not a multiple of 128, the output last dim lowers
    # to masked stores; a lane-dense repack would need in-kernel masking of the K mean,
    # so we keep full-K blocks (correct, slightly lower store efficiency for tiny K).
    return pl.pallas_call(
        _cepstral_norm_kernel,
        out_shape=jax.ShapeDtypeStruct((M, N, K), y.dtype),
        grid_spec=pltpu.PrefetchScalarGridSpec(
            num_scalar_prefetch=0,
            grid=grid,
            in_specs=[
                pl.BlockSpec((tm, tn, K), lambda m, n: (m, n, 0)),   # y tile
                pl.BlockSpec((1, tn, 1), lambda m, n: (0, n, 0)),    # gamma (channel tile)
                pl.BlockSpec((1, tn, 1), lambda m, n: (0, n, 0)),    # beta  (channel tile)
            ],
            out_specs=pl.BlockSpec((tm, tn, K), lambda m, n: (m, n, 0)),
        ),
        compiler_params=pltpu.CompilerParams(
            # Both grid axes are fully independent (reduction is inside the block).
            dimension_semantics=("parallel", "parallel"),
            # Explicit, generation-safe limit (<= scoped default on v6e/v7x, raises v5e's 16 MiB).
            vmem_limit_bytes=32 * 1024 * 1024,
        ),
    )(y, gamma, beta)


def reference_cepstral_norm(y, gamma, beta):
    """Pure-JAX reference matching the PyTorch forward exactly."""
    mean = jnp.mean(y, axis=2, keepdims=True)
    var = jnp.mean((y - mean) ** 2, axis=2, keepdims=True)
    return gamma * (y - mean) / jnp.power(var + EPS, 0.5) + beta


if __name__ == "__main__":
    key = jax.random.PRNGKey(0)

    # Small shapes consistent with the module: [M, N, K] = [batch, channel, length]
    M, N, K = 2, 4, 16
    y = jax.random.normal(key, (M, N, K), dtype=jnp.float32)

    # reset_parameters(): gamma = 1, beta = 0
    gamma = jnp.ones((1, N, 1), dtype=jnp.float32)
    beta = jnp.zeros((1, N, 1), dtype=jnp.float32)

    out = cepstral_norm(y, gamma, beta)
    out = jax.block_until_ready(out)

    ref = reference_cepstral_norm(y, gamma, beta)
    assert out.shape == (M, N, K)
    assert jnp.allclose(out, ref, atol=1e-5, rtol=1e-5), "mismatch vs reference"

    print("KERNEL_OK")
</pallas_src>

<mosaic_0001>
module attributes {stable_mosaic.version = 11 : i64} {
  func.func @_cepstral_norm_kernel(%arg0: i32, %arg1: i32, %arg2: memref<2x4x16xf32, #tpu.memory_space<vmem>>, %arg3: memref<1x4x1xf32, #tpu.memory_space<vmem>>, %arg4: memref<1x4x1xf32, #tpu.memory_space<vmem>>, %arg5: memref<2x4x16xf32, #tpu.memory_space<vmem>>) attributes {dimension_semantics = [#tpu.dimension_semantics<parallel>, #tpu.dimension_semantics<parallel>], iteration_bounds = array<i64: 1, 1>, scalar_prefetch = 0 : i64, scratch_operands = 0 : i64, tpu.core_type = #tpu.core_type<tc>, window_params = [{transform_indices = @transform_0, window_bounds = array<i64: 2, 4, 16>}, {transform_indices = @transform_1, window_bounds = array<i64: 1, 4, 1>}, {transform_indices = @transform_2, window_bounds = array<i64: 1, 4, 1>}, {transform_indices = @transform_3, window_bounds = array<i64: 2, 4, 16>}]} {
    %c0 = arith.constant 0 : index
    %c0_0 = arith.constant 0 : index
    %c0_1 = arith.constant 0 : index
    %0 = vector.load %arg2[%c0, %c0_0, %c0_1] : memref<2x4x16xf32, #tpu.memory_space<vmem>>, vector<2x4x16xf32>
    %cst = arith.constant dense<0.000000e+00> : vector<2x4xf32>
    %1 = vector.multi_reduction <add>, %0, %cst [2] : vector<2x4x16xf32> to vector<2x4xf32>
    %2 = vector.shape_cast %1 : vector<2x4xf32> to vector<2x4x1xf32>
    %cst_2 = arith.constant 1.600000e+01 : f32
    %3 = vector.broadcast %cst_2 : f32 to vector<2x4x1xf32>
    %4 = arith.divf %2, %3 : vector<2x4x1xf32>
    %5 = vector.broadcast %4 : vector<2x4x1xf32> to vector<2x4x16xf32>
    %6 = arith.subf %0, %5 : vector<2x4x16xf32>
    %7 = arith.mulf %6, %6 : vector<2x4x16xf32>
    %cst_3 = arith.constant dense<0.000000e+00> : vector<2x4xf32>
    %8 = vector.multi_reduction <add>, %7, %cst_3 [2] : vector<2x4x16xf32> to vector<2x4xf32>
    %9 = vector.shape_cast %8 : vector<2x4xf32> to vector<2x4x1xf32>
    %cst_4 = arith.constant 1.600000e+01 : f32
    %10 = vector.broadcast %cst_4 : f32 to vector<2x4x1xf32>
    %11 = arith.divf %9, %10 : vector<2x4x1xf32>
    %cst_5 = arith.constant 1.000000e-07 : f32
    %12 = vector.broadcast %cst_5 : f32 to vector<2x4x1xf32>
    %13 = arith.addf %11, %12 : vector<2x4x1xf32>
    %14 = math.rsqrt %13 : vector<2x4x1xf32>
    %c0_6 = arith.constant 0 : index
    %c0_7 = arith.constant 0 : index
    %c0_8 = arith.constant 0 : index
    %15 = vector.load %arg3[%c0_6, %c0_7, %c0_8] : memref<1x4x1xf32, #tpu.memory_space<vmem>>, vector<1x4x1xf32>
    %c0_9 = arith.constant 0 : index
    %c0_10 = arith.constant 0 : index
    %c0_11 = arith.constant 0 : index
    %16 = vector.load %arg4[%c0_9, %c0_10, %c0_11] : memref<1x4x1xf32, #tpu.memory_space<vmem>>, vector<1x4x1xf32>
    %17 = vector.broadcast %15 : vector<1x4x1xf32> to vector<2x4x1xf32>
    %18 = arith.mulf %17, %14 : vector<2x4x1xf32>
    %19 = arith.mulf %4, %18 : vector<2x4x1xf32>
    %20 = vector.broadcast %16 : vector<1x4x1xf32> to vector<2x4x1xf32>
    %21 = arith.subf %20, %19 : vector<2x4x1xf32>
    %22 = vector.broadcast %18 : vector<2x4x1xf32> to vector<2x4x16xf32>
    %23 = arith.mulf %0, %22 : vector<2x4x16xf32>
    %24 = vector.broadcast %21 : vector<2x4x1xf32> to vector<2x4x16xf32>
    %25 = arith.addf %23, %24 : vector<2x4x16xf32>
    %c0_12 = arith.constant 0 : index
    %c0_13 = arith.constant 0 : index
    %c0_14 = arith.constant 0 : index
    %26 = vector.load %arg5[%c0_12, %c0_13, %c0_14] : memref<2x4x16xf32, #tpu.memory_space<vmem>>, vector<2x4x16xf32>
    tpu.vector_store %arg5[%c0_12, %c0_13, %c0_14], %25 {strides = array<i32>} : memref<2x4x16xf32, #tpu.memory_space<vmem>>, vector<2x4x16xf32>,
    return
  }
  func.func @transform_0(%arg0: i32, %arg1: i32) -> (i32, i32, i32) {
    %c0_i32 = arith.constant 0 : i32
    %c0_i32_0 = arith.constant 0 : i32
    return %arg0, %arg1, %c0_i32 : i32, i32, i32
  }
  func.func @transform_1(%arg0: i32, %arg1: i32) -> (i32, i32, i32) {
    %c0_i32 = arith.constant 0 : i32
    %c0_i32_0 = arith.constant 0 : i32
    %c0_i32_1 = arith.constant 0 : i32
    return %c0_i32, %arg1, %c0_i32_0 : i32, i32, i32
  }
  func.func @transform_2(%arg0: i32, %arg1: i32) -> (i32, i32, i32) {
    %c0_i32 = arith.constant 0 : i32
    %c0_i32_0 = arith.constant 0 : i32
    %c0_i32_1 = arith.constant 0 : i32
    return %c0_i32, %arg1, %c0_i32_0 : i32, i32, i32
  }
  func.func @transform_3(%arg0: i32, %arg1: i32) -> (i32, i32, i32) {
    %c0_i32 = arith.constant 0 : i32
    %c0_i32_0 = arith.constant 0 : i32
    return %arg0, %arg1, %c0_i32 : i32, i32, i32
  }
}

</mosaic_0001>

<bundles_post_ra>
// kernel: tpu_custom_call.1
= control target key start
LH: loop header
LB: loop body
LE: loop exit
PB: predicated region body
PF: predicated region fallthrough
CT: control target
= control target key end

     0   :  { %vm17_vm0 = vcmask 125952   ;;  %s215_s0 = inlined_call_operand.vmem [shape: f32[2,4,16], index: 0, kind: input, shape index: {}]   ;;  %s216_s1 = inlined_call_operand.vmem [shape: f32[1,4,1], index: 1, kind: input, shape index: {}]   ;;  %s217_s2 = inlined_call_operand.vmem [shape: f32[1,4,1], index: 2, kind: input, shape index: {}]   ;;  %s218_s3 = inlined_call_operand.hbm [shape: f32[2,4,16], index: 3, kind: output, shape index: {}]  }
   0x1   :  { %v187_v0 = vld [vmem:[%s215_s0] sm:$0xf] }
   0x2   :  { %v18_v1 = vsel %vm17_vm0, %v187_v0, 0.0 }
   0x3   :  { %8 = vsyncpa [#allocation3], 0  ;;  %19 = vadd.xlane.f32.xlu0 %v18_v1  ;;  %v194_v2 = vld [vmem:[%s215_s0 + $0x4] sm:$0xf]  ;;  %v159_v4 = vmov 16.0   ;;  %v160_v21 = vmov 0  }
   0x4   :  { %v21_v3 = vsel %vm17_vm0, %v194_v2, 0.0  ;;  %127 = vrcp.f32 %v159_v4  ;;  %124 = vset.pattern.permute.xlu2 %v160_v21  ;;  %125 = vset.pattern.permute.xlu0 %v160_v21  ;;  %v67_v36 = vld [vmem:[%s216_s1] sm:$0xf]  ;;  %s161_s1 = smov [#allocation2]   ;;  %s107_s21 = sshll.u32 %s218_s3, 4  ;;  %s108_s21 = int_to_ptr.hbm [resolvable:$true] %s107_s21 }
   0x5   :  { %126 = vset.pattern.permute.xlu1 %v160_v21  ;;  %v68_v41 = vld [vmem:[%s217_s2] sm:$0xf]  ;;  %s105_s2 = sshll.u32 %s161_s1, 4  ;;  %s162_s22 = smov 64   ;;  %s106_s2 = int_to_ptr.vmem [resolvable:$true] %s105_s2 }
   0x6   :  { %s163_s23 = smov 4  }
   0xa   :  { %v128_v5 = vpop.eup %127 }
   0xb   :  { %22 = vadd.xlane.f32.xlu0 %v21_v3  ;;  %v25_v6 = vmul.f32 16.0, %v128_v5  ;;  %vm29_vm1 = vweird.f32 %v128_v5 }
   0xd   :  { %v26_v7 = vsub.f32 1.0, %v25_v6 }
   0xf   :  { %v27_v8 = vmul.f32 %v128_v5, %v26_v7 }
  0x11   :  { %v28_v9 = vadd.f32 %v128_v5, %v27_v8 }
  0x13   :  { %v30_v10 = vsel %vm29_vm1, %v128_v5, %v28_v9 }
  0x76   :  { %v20_v11 = vpop.xlane.xlu0 %19 }
  0x77   :  { %v31_v12 = vmul.f32 %v30_v10, %v20_v11 }
  0x79   :  { %v33_v13 = vsub.f32 %v187_v0, %v31_v12 }
  0x7b   :  { %v35_v14 = vmul.f32 %v33_v13, %v33_v13 }
  0x7d   :  { %v37_v15 = vsel %vm17_vm0, %v35_v14, 0.0 }
  0x7e   :  { %38 = vadd.xlane.f32.xlu1 %v37_v15  ;;  %v23_v16 = vpop.xlane.xlu0 %22 }
  0x7f   :  { %v32_v17 = vmul.f32 %v30_v10, %v23_v16 }
  0x81   :  { %v34_v18 = vsub.f32 %v194_v2, %v32_v17 }
  0x83   :  { %v36_v19 = vmul.f32 %v34_v18, %v34_v18 }
  0x85   :  { %v40_v20 = vsel %vm17_vm0, %v36_v19, 0.0 }
  0x86   :  { %41 = vadd.xlane.f32.xlu1 %v40_v20 }
  0xf1   :  { %v39_v22 = vpop.xlane.xlu1 %38 }
  0xf2   :  { %v43_v23 = vmul.f32 %v39_v22, %v30_v10 }
  0xf4   :  { %v45_v24 = vadd.f32 1e-07, %v43_v23 }
  0xf6   :  { %129 = vrsqrt.f32 %v45_v24  ;;  %vm53_vm3 = vweird.f32 %v45_v24 }
  0xf9   :  { %v42_v25 = vpop.xlane.xlu1 %41 }
  0xfa   :  { %v44_v26 = vmul.f32 %v42_v25, %v30_v10 }
  0xfc   :  { %v130_v27 = vpop.eup %129  ;;  %v46_v28 = vadd.f32 1e-07, %v44_v26 }
  0xfd   :  { %v48_v29 = vmul.f32 %v130_v27, %v45_v24  ;;  %vm54_vm2 = vweird.f32 %v130_v27 }
  0xfe   :  { %131 = vrsqrt.f32 %v46_v28  ;;  %vm55_vm4 = vmor %vm53_vm3, %vm54_vm2  ;;  %vm63_vm6 = vweird.f32 %v46_v28 }
  0xff   :  { %v49_v30 = vmul.f32 %v130_v27, %v48_v29 }
 0x101   :  { %v50_v31 = vmul.f32 0.5, %v49_v30 }
 0x103   :  { %v51_v32 = vsub.f32 1.5, %v50_v31 }
 0x104   :  { %v132_v33 = vpop.eup %131 }
 0x105   :  { %v58_v34 = vmul.f32 %v132_v33, %v46_v28  ;;  %v52_v35 = vmul.f32 %v130_v27, %v51_v32  ;;  %vm64_vm5 = vweird.f32 %v132_v33 }
 0x106   :  { %vm65_vm7 = vmor %vm63_vm6, %vm64_vm5 }
 0x107   :  { %v59_v37 = vmul.f32 %v132_v33, %v58_v34  ;;  %v56_v38 = vsel %vm55_vm4, %v130_v27, %v52_v35 }
 0x108   :  { %v69_v39 = vmul.f32 %v67_v36, %v56_v38 }
 0x109   :  { %v60_v40 = vmul.f32 0.5, %v59_v37 }
 0x10a   :  { %77 = vperm.xlu2 %124, %v69_v39   ;;  %v71_v42 = vmul.f32 %v69_v39, %v31_v12 }
 0x10b   :  { %v61_v43 = vsub.f32 1.5, %v60_v40 }
 0x10c   :  { %v73_v44 = vsub.f32 %v68_v41, %v71_v42 }
 0x10d   :  { %v62_v45 = vmul.f32 %v132_v33, %v61_v43 }
 0x10e   :  { %89 = vperm.xlu0 %125, %v73_v44  }
 0x10f   :  { %v66_v46 = vsel %vm65_vm7, %v132_v33, %v62_v45 }
 0x110   :  { %v70_v47 = vmul.f32 %v67_v36, %v66_v46 }
 0x112   :  { %v72_v48 = vmul.f32 %v70_v47, %v32_v17  ;;  %82 = vperm.xlu2 %124, %v70_v47  }
 0x114   :  { %v74_v49 = vsub.f32 %v68_v41, %v72_v48 }
 0x116   :  { %94 = vperm.xlu1 %126, %v74_v49  }
 0x164   :  { %v78_v50 = vpop.permute.xlu2 %77 }
 0x165   :  { %v85_v51 = vmul.f32 %v78_v50, %v187_v0 }
 0x16c   :  { %v83_v54 = vpop.permute.xlu2 %82 }
 0x16d   :  { %v86_v55 = vmul.f32 %v83_v54, %v194_v2 }
 0x180   :  { %v90_v52 = vpop.permute.xlu0 %89 }
 0x181   :  { %v97_v53 = vadd.f32 %v90_v52, %v85_v51 }
 0x183   :  { %99 = vst.msk [vmem:[#allocation2] sm:$0xf] %vm17_vm0, %v97_v53 }
 0x188   :  { %v95_v56 = vpop.permute.xlu1 %94 }
 0x189   :  { %v98_v57 = vadd.f32 %v95_v56, %v86_v55 }
 0x18b   :  { %100 = vst.msk [vmem:[#allocation2 + $0x4] sm:$0xf] %vm17_vm0, %v98_v57 }
 0x18c   :  { %113 = dma.vmem_to_hbm [thread:$0]  %s106_s2, 128, %s108_s21, [#allocation3], %s162_s22, %s162_s22, %s163_s23  }
 0x18d   :  { %157 = dma.done.wait [#allocation3], 128  }
 0x18e   :  { %158 = vsyncadd [#allocation3], 4294967168 }
 0x18f   :  { %118 = vsyncpa [#allocation3], 1 }

</bundles_post_ra>
